<compile_context>
chip_gen: v7x
topology: tpu7x:2x2x1
jax: 0.10.0
libtpu: 0.0.40
codegen_flags: <defaults>
</compile_context>

<pallas_src>
import jax
import jax.numpy as jnp
from jax.experimental import pallas as pl
from jax.experimental.pallas import tpu as pltpu


DROP_P = 0.3
KEEP_SCALE = 1.0 / (1.0 - DROP_P)
DROP_THRESHOLD = int(round(DROP_P * (1 << 32)))   # uint32 "drop" threshold
HPAD = 128                                        # hidden widths padded to one full lane width
IN_F = 60
OUT_F = 5


def _round_up(n, m):
    return ((n + m - 1) // m) * m


def filenet_kernel(x_ref, bits1_ref, bits2_ref,
                   w1_ref, b1_ref, w2_ref, b2_ref,
                   w3_ref, b3_ref, w4_ref, b4_ref,
                   out_ref):
    thr = jnp.uint32(DROP_THRESHOLD)
    scale = jnp.float32(KEEP_SCALE)

    x = x_ref[...]                                                    # (TB, 60) f32

    # fc1 -> fused ReLU + inverted dropout (integer-threshold keep mask)
    h = jnp.dot(x.astype(jnp.bfloat16), w1_ref[...],
                preferred_element_type=jnp.float32) + b1_ref[...]     # (TB, 128)
    keep1 = (bits1_ref[...] >= thr) & (h > 0.0)
    h = jnp.where(keep1, h * scale, 0.0)

    # fc2 -> fused ReLU + dropout
    h = jnp.dot(h.astype(jnp.bfloat16), w2_ref[...],
                preferred_element_type=jnp.float32) + b2_ref[...]     # (TB, 128)
    keep2 = (bits2_ref[...] >= thr) & (h > 0.0)
    h = jnp.where(keep2, h * scale, 0.0)

    # fc3 -> ReLU
    h = jnp.dot(h.astype(jnp.bfloat16), w3_ref[...],
                preferred_element_type=jnp.float32) + b3_ref[...]     # (TB, 128)
    h = jnp.maximum(h, 0.0)

    # fc4 -> softmax over the 5 real classes (output side is NOT padded)
    logits = jnp.dot(h.astype(jnp.bfloat16), w4_ref[...],
                     preferred_element_type=jnp.float32) + b4_ref[...]  # (TB, 5)
    m = jnp.max(logits, axis=-1, keepdims=True)
    e = jnp.exp(logits - m)
    out_ref[...] = e / jnp.sum(e, axis=-1, keepdims=True)


def filenet_forward(x, packed, dropout_key, *, tile_b=1024):
    """x: (B, 60) float32.  packed: dict from pack_params().  Returns (B, 5) softmax."""
    B = x.shape[0]
    TB = min(tile_b, _round_up(B, 8))        # batch tile (multiple of 8 sublanes)
    Bp = _round_up(B, TB)
    if Bp != B:
        x = jnp.pad(x, ((0, Bp - B), (0, 0)))

    # Per-row, per-layer dropout bits (independent mask for every batch row).
    k1, k2 = jax.random.split(dropout_key)
    bits1 = jax.random.bits(k1, (Bp, HPAD), dtype=jnp.uint32)
    bits2 = jax.random.bits(k2, (Bp, HPAD), dtype=jnp.uint32)

    grid = (Bp // TB,)

    def row_spec(width):
        return pl.BlockSpec((TB, width), lambda i: (i, 0))

    def const_spec(arr):
        return pl.BlockSpec(arr.shape, lambda i: (0, 0))   # VMEM-resident across grid

    weight_bytes = sum(int(a.size) * a.dtype.itemsize for a in packed.values())
    cost = pl.CostEstimate(
        flops=2 * B * (60 * 90 + 90 * 120 + 120 * 60 + 60 * 5),
        transcendentals=B * OUT_F,
        bytes_accessed=B * (IN_F + 2 * HPAD + OUT_F) * 4 + weight_bytes,
    )

    out = pl.pallas_call(
        filenet_kernel,
        out_shape=jax.ShapeDtypeStruct((Bp, OUT_F), jnp.float32),
        grid=grid,
        in_specs=[
            row_spec(IN_F),           # x tile
            row_spec(HPAD),           # dropout bits, layer 1
            row_spec(HPAD),           # dropout bits, layer 2
            const_spec(packed["w1"]), const_spec(packed["b1"]),
            const_spec(packed["w2"]), const_spec(packed["b2"]),
            const_spec(packed["w3"]), const_spec(packed["b3"]),
            const_spec(packed["w4"]), const_spec(packed["b4"]),
        ],
        out_specs=pl.BlockSpec((TB, OUT_F), lambda i: (i, 0)),
        compiler_params=pltpu.CompilerParams(
            dimension_semantics=("parallel",)),        # megacore split on v7x
        cost_estimate=cost,
    )(x, bits1, bits2,
      packed["w1"], packed["b1"], packed["w2"], packed["b2"],
      packed["w3"], packed["b3"], packed["w4"], packed["b4"])

    return out[:B]


def init_params(key):
    """torch.nn.Linear-style init (U(-1/sqrt(fan_in), +)); weights stored as (in, out) = W^T."""
    dims = [(60, 90), (90, 120), (120, 60), (60, 5)]
    params = {}
    keys = jax.random.split(key, 2 * len(dims))
    for i, (fan_in, fan_out) in enumerate(dims):
        bound = 1.0 / float(fan_in) ** 0.5
        params[f"w{i + 1}"] = jax.random.uniform(
            keys[2 * i], (fan_in, fan_out), minval=-bound, maxval=bound, dtype=jnp.float32)
        params[f"b{i + 1}"] = jax.random.uniform(
            keys[2 * i + 1], (1, fan_out), minval=-bound, maxval=bound, dtype=jnp.float32)
    return params


def pack_params(params):
    """Zero-pad hidden widths to 128 (lane-dense) and cast weights to bf16.

    Padded bias entries are 0, so padded columns stay exactly 0 through
    ReLU/dropout, and the zero weight rows of the next layer ignore them.
    The final layer keeps its true output width (5) so softmax is unaffected.
    """
    def pad(a, rows, cols):
        out = jnp.zeros((rows, cols), a.dtype)
        return out.at[: a.shape[0], : a.shape[1]].set(a)

    return {
        "w1": pad(params["w1"], IN_F, HPAD).astype(jnp.bfloat16),
        "b1": pad(params["b1"], 1, HPAD),
        "w2": pad(params["w2"], HPAD, HPAD).astype(jnp.bfloat16),
        "b2": pad(params["b2"], 1, HPAD),
        "w3": pad(params["w3"], HPAD, HPAD).astype(jnp.bfloat16),
        "b3": pad(params["b3"], 1, HPAD),
        "w4": pad(params["w4"], HPAD, OUT_F).astype(jnp.bfloat16),
        "b4": params["b4"],
    }


if __name__ == "__main__":
    key = jax.random.PRNGKey(0)
    pkey, xkey, dkey = jax.random.split(key, 3)

    params = init_params(pkey)
    packed = pack_params(params)

    B = 8
    x = jax.random.normal(xkey, (B, IN_F), dtype=jnp.float32)

    out = filenet_forward(x, packed, dkey)
    out = jax.block_until_ready(out)

    assert out.shape == (B, OUT_F)
    assert bool(jnp.all(jnp.isfinite(out)))
    # softmax rows sum to 1
    assert bool(jnp.allclose(jnp.sum(out, axis=1), 1.0, atol=1e-5))

    print("KERNEL_OK")
</pallas_src>

<mosaic_0001>
module attributes {stable_mosaic.version = 11 : i64} {
  func.func @filenet_kernel(%arg0: i32, %arg1: memref<8x60xf32, #tpu.memory_space<vmem>>, %arg2: memref<8x128xi32, #tpu.memory_space<vmem>>, %arg3: memref<8x128xi32, #tpu.memory_space<vmem>>, %arg4: memref<60x128xbf16, #tpu.memory_space<vmem>>, %arg5: memref<1x128xf32, #tpu.memory_space<vmem>>, %arg6: memref<128x128xbf16, #tpu.memory_space<vmem>>, %arg7: memref<1x128xf32, #tpu.memory_space<vmem>>, %arg8: memref<128x128xbf16, #tpu.memory_space<vmem>>, %arg9: memref<1x128xf32, #tpu.memory_space<vmem>>, %arg10: memref<128x5xbf16, #tpu.memory_space<vmem>>, %arg11: memref<1x5xf32, #tpu.memory_space<vmem>>, %arg12: memref<8x5xf32, #tpu.memory_space<vmem>>) attributes {dimension_semantics = [#tpu.dimension_semantics<parallel>], iteration_bounds = array<i64: 1>, scalar_prefetch = 0 : i64, scratch_operands = 0 : i64, tpu.core_type = #tpu.core_type<tc>, window_params = [{transform_indices = @transform_0, window_bounds = array<i64: 8, 60>}, {transform_indices = @transform_1, window_bounds = array<i64: 8, 128>}, {transform_indices = @transform_2, window_bounds = array<i64: 8, 128>}, {pipeline_mode = #tpu.pipeline_mode<synchronous>, transform_indices = @transform_3, window_bounds = array<i64: 60, 128>}, {pipeline_mode = #tpu.pipeline_mode<synchronous>, transform_indices = @transform_4, window_bounds = array<i64: 1, 128>}, {pipeline_mode = #tpu.pipeline_mode<synchronous>, transform_indices = @transform_5, window_bounds = array<i64: 128, 128>}, {pipeline_mode = #tpu.pipeline_mode<synchronous>, transform_indices = @transform_6, window_bounds = array<i64: 1, 128>}, {pipeline_mode = #tpu.pipeline_mode<synchronous>, transform_indices = @transform_7, window_bounds = array<i64: 128, 128>}, {pipeline_mode = #tpu.pipeline_mode<synchronous>, transform_indices = @transform_8, window_bounds = array<i64: 1, 128>}, {pipeline_mode = #tpu.pipeline_mode<synchronous>, transform_indices = @transform_9, window_bounds = array<i64: 128, 5>}, {pipeline_mode = #tpu.pipeline_mode<synchronous>, transform_indices = @transform_10, window_bounds = array<i64: 1, 5>}, {transform_indices = @transform_11, window_bounds = array<i64: 8, 5>}]} {
    %c0 = arith.constant 0 : index
    %c0_0 = arith.constant 0 : index
    %0 = vector.load %arg1[%c0, %c0_0] : memref<8x60xf32, #tpu.memory_space<vmem>>, vector<8x60xf32>
    %1 = arith.truncf %0 : vector<8x60xf32> to vector<8x60xbf16>
    %c0_1 = arith.constant 0 : index
    %c0_2 = arith.constant 0 : index
    %2 = vector.load %arg4[%c0_1, %c0_2] : memref<60x128xbf16, #tpu.memory_space<vmem>>, vector<60x128xbf16>
    %cst = arith.constant dense<0.000000e+00> : vector<8x128xf32>
    %3 = tpu.matmul %1, %2, %cst {dimension_numbers = #tpu.dot_dimension_numbers<[1], [0], [0], [1], [0, 0, 1, 1], [], []>} : vector<8x60xbf16>, vector<60x128xbf16>, vector<8x128xf32> -> vector<8x128xf32>
    %c0_3 = arith.constant 0 : index
    %c0_4 = arith.constant 0 : index
    %4 = vector.load %arg5[%c0_3, %c0_4] : memref<1x128xf32, #tpu.memory_space<vmem>>, vector<1x128xf32>
    %5 = vector.broadcast %4 : vector<1x128xf32> to vector<8x128xf32>
    %6 = arith.addf %3, %5 : vector<8x128xf32>
    %c0_5 = arith.constant 0 : index
    %c0_6 = arith.constant 0 : index
    %7 = vector.load %arg2[%c0_5, %c0_6] : memref<8x128xi32, #tpu.memory_space<vmem>>, vector<8x128xi32>
    %c1288490189_i32 = arith.constant 1288490189 : i32
    %8 = vector.broadcast %c1288490189_i32 : i32 to vector<8x128xi32>
    %9 = arith.cmpi uge, %7, %8 : vector<8x128xi32>
    %cst_7 = arith.constant 0.000000e+00 : f32
    %10 = vector.broadcast %cst_7 : f32 to vector<8x128xf32>
    %11 = arith.cmpf ogt, %6, %10 : vector<8x128xf32>
    %12 = arith.andi %9, %11 : vector<8x128xi1>
    %cst_8 = arith.constant 1.42857146 : f32
    %13 = vector.broadcast %cst_8 : f32 to vector<8x128xf32>
    %14 = arith.mulf %6, %13 : vector<8x128xf32>
    %cst_9 = arith.constant 0.000000e+00 : f32
    %15 = vector.broadcast %cst_9 : f32 to vector<8x128xf32>
    %16 = arith.select %12, %14, %15 : vector<8x128xi1>, vector<8x128xf32>
    %17 = arith.truncf %16 : vector<8x128xf32> to vector<8x128xbf16>
    %c0_10 = arith.constant 0 : index
    %c0_11 = arith.constant 0 : index
    %18 = vector.load %arg6[%c0_10, %c0_11] : memref<128x128xbf16, #tpu.memory_space<vmem>>, vector<128x128xbf16>
    %cst_12 = arith.constant dense<0.000000e+00> : vector<8x128xf32>
    %19 = tpu.matmul %17, %18, %cst_12 {dimension_numbers = #tpu.dot_dimension_numbers<[1], [0], [0], [1], [0, 0, 1, 1], [], []>} : vector<8x128xbf16>, vector<128x128xbf16>, vector<8x128xf32> -> vector<8x128xf32>
    %c0_13 = arith.constant 0 : index
    %c0_14 = arith.constant 0 : index
    %20 = vector.load %arg7[%c0_13, %c0_14] : memref<1x128xf32, #tpu.memory_space<vmem>>, vector<1x128xf32>
    %21 = vector.broadcast %20 : vector<1x128xf32> to vector<8x128xf32>
    %22 = arith.addf %19, %21 : vector<8x128xf32>
    %c0_15 = arith.constant 0 : index
    %c0_16 = arith.constant 0 : index
    %23 = vector.load %arg3[%c0_15, %c0_16] : memref<8x128xi32, #tpu.memory_space<vmem>>, vector<8x128xi32>
    %c1288490189_i32_17 = arith.constant 1288490189 : i32
    %24 = vector.broadcast %c1288490189_i32_17 : i32 to vector<8x128xi32>
    %25 = arith.cmpi uge, %23, %24 : vector<8x128xi32>
    %cst_18 = arith.constant 0.000000e+00 : f32
    %26 = vector.broadcast %cst_18 : f32 to vector<8x128xf32>
    %27 = arith.cmpf ogt, %22, %26 : vector<8x128xf32>
    %28 = arith.andi %25, %27 : vector<8x128xi1>
    %cst_19 = arith.constant 1.42857146 : f32
    %29 = vector.broadcast %cst_19 : f32 to vector<8x128xf32>
    %30 = arith.mulf %22, %29 : vector<8x128xf32>
    %cst_20 = arith.constant 0.000000e+00 : f32
    %31 = vector.broadcast %cst_20 : f32 to vector<8x128xf32>
    %32 = arith.select %28, %30, %31 : vector<8x128xi1>, vector<8x128xf32>
    %33 = arith.truncf %32 : vector<8x128xf32> to vector<8x128xbf16>
    %c0_21 = arith.constant 0 : index
    %c0_22 = arith.constant 0 : index
    %34 = vector.load %arg8[%c0_21, %c0_22] : memref<128x128xbf16, #tpu.memory_space<vmem>>, vector<128x128xbf16>
    %cst_23 = arith.constant dense<0.000000e+00> : vector<8x128xf32>
    %35 = tpu.matmul %33, %34, %cst_23 {dimension_numbers = #tpu.dot_dimension_numbers<[1], [0], [0], [1], [0, 0, 1, 1], [], []>} : vector<8x128xbf16>, vector<128x128xbf16>, vector<8x128xf32> -> vector<8x128xf32>
    %c0_24 = arith.constant 0 : index
    %c0_25 = arith.constant 0 : index
    %36 = vector.load %arg9[%c0_24, %c0_25] : memref<1x128xf32, #tpu.memory_space<vmem>>, vector<1x128xf32>
    %37 = vector.broadcast %36 : vector<1x128xf32> to vector<8x128xf32>
    %38 = arith.addf %35, %37 : vector<8x128xf32>
    %cst_26 = arith.constant 0.000000e+00 : f32
    %39 = vector.broadcast %cst_26 : f32 to vector<8x128xf32>
    %40 = arith.maximumf %38, %39 : vector<8x128xf32>
    %41 = arith.truncf %40 : vector<8x128xf32> to vector<8x128xbf16>
    %c0_27 = arith.constant 0 : index
    %c0_28 = arith.constant 0 : index
    %42 = vector.load %arg10[%c0_27, %c0_28] : memref<128x5xbf16, #tpu.memory_space<vmem>>, vector<128x5xbf16>
    %cst_29 = arith.constant dense<0.000000e+00> : vector<8x5xf32>
    %43 = tpu.matmul %41, %42, %cst_29 {dimension_numbers = #tpu.dot_dimension_numbers<[1], [0], [0], [1], [0, 0, 1, 1], [], []>} : vector<8x128xbf16>, vector<128x5xbf16>, vector<8x5xf32> -> vector<8x5xf32>
    %c0_30 = arith.constant 0 : index
    %c0_31 = arith.constant 0 : index
    %44 = vector.load %arg11[%c0_30, %c0_31] : memref<1x5xf32, #tpu.memory_space<vmem>>, vector<1x5xf32>
    %45 = vector.broadcast %44 : vector<1x5xf32> to vector<8x5xf32>
    %46 = arith.addf %43, %45 : vector<8x5xf32>
    %cst_32 = arith.constant dense<0xFF800000> : vector<8xf32>
    %47 = vector.multi_reduction <maximumf>, %46, %cst_32 [1] : vector<8x5xf32> to vector<8xf32>
    %48 = vector.shape_cast %47 : vector<8xf32> to vector<8x1xf32>
    %49 = vector.broadcast %48 : vector<8x1xf32> to vector<8x5xf32>
    %50 = arith.subf %46, %49 : vector<8x5xf32>
    %51 = math.exp %50 : vector<8x5xf32>
    %cst_33 = arith.constant dense<0.000000e+00> : vector<8xf32>
    %52 = vector.multi_reduction <add>, %51, %cst_33 [1] : vector<8x5xf32> to vector<8xf32>
    %53 = vector.shape_cast %52 : vector<8xf32> to vector<8x1xf32>
    %54 = vector.broadcast %53 : vector<8x1xf32> to vector<8x5xf32>
    %55 = arith.divf %51, %54 : vector<8x5xf32>
    %c0_34 = arith.constant 0 : index
    %c0_35 = arith.constant 0 : index
    %56 = vector.load %arg12[%c0_34, %c0_35] : memref<8x5xf32, #tpu.memory_space<vmem>>, vector<8x5xf32>
    tpu.vector_store %arg12[%c0_34, %c0_35], %55 {strides = array<i32>} : memref<8x5xf32, #tpu.memory_space<vmem>>, vector<8x5xf32>,
    return
  }
  func.func @transform_0(%arg0: i32) -> (i32, i32) {
    %c0_i32 = arith.constant 0 : i32
    %c0_i32_0 = arith.constant 0 : i32
    return %arg0, %c0_i32 : i32, i32
  }
  func.func @transform_1(%arg0: i32) -> (i32, i32) {
    %c0_i32 = arith.constant 0 : i32
    %c0_i32_0 = arith.constant 0 : i32
    return %arg0, %c0_i32 : i32, i32
  }
  func.func @transform_2(%arg0: i32) -> (i32, i32) {
    %c0_i32 = arith.constant 0 : i32
    %c0_i32_0 = arith.constant 0 : i32
    return %arg0, %c0_i32 : i32, i32
  }
  func.func @transform_3(%arg0: i32) -> (i32, i32) {
    %c0_i32 = arith.constant 0 : i32
    %c0_i32_0 = arith.constant 0 : i32
    %c0_i32_1 = arith.constant 0 : i32
    return %c0_i32, %c0_i32_0 : i32, i32
  }
  func.func @transform_4(%arg0: i32) -> (i32, i32) {
    %c0_i32 = arith.constant 0 : i32
    %c0_i32_0 = arith.constant 0 : i32
    %c0_i32_1 = arith.constant 0 : i32
    return %c0_i32, %c0_i32_0 : i32, i32
  }
  func.func @transform_5(%arg0: i32) -> (i32, i32) {
    %c0_i32 = arith.constant 0 : i32
    %c0_i32_0 = arith.constant 0 : i32
    %c0_i32_1 = arith.constant 0 : i32
    return %c0_i32, %c0_i32_0 : i32, i32
  }
  func.func @transform_6(%arg0: i32) -> (i32, i32) {
    %c0_i32 = arith.constant 0 : i32
    %c0_i32_0 = arith.constant 0 : i32
    %c0_i32_1 = arith.constant 0 : i32
    return %c0_i32, %c0_i32_0 : i32, i32
  }
  func.func @transform_7(%arg0: i32) -> (i32, i32) {
    %c0_i32 = arith.constant 0 : i32
    %c0_i32_0 = arith.constant 0 : i32
    %c0_i32_1 = arith.constant 0 : i32
    return %c0_i32, %c0_i32_0 : i32, i32
  }
  func.func @transform_8(%arg0: i32) -> (i32, i32) {
    %c0_i32 = arith.constant 0 : i32
    %c0_i32_0 = arith.constant 0 : i32
    %c0_i32_1 = arith.constant 0 : i32
    return %c0_i32, %c0_i32_0 : i32, i32
  }
  func.func @transform_9(%arg0: i32) -> (i32, i32) {
    %c0_i32 = arith.constant 0 : i32
    %c0_i32_0 = arith.constant 0 : i32
    %c0_i32_1 = arith.constant 0 : i32
    return %c0_i32, %c0_i32_0 : i32, i32
  }
  func.func @transform_10(%arg0: i32) -> (i32, i32) {
    %c0_i32 = arith.constant 0 : i32
    %c0_i32_0 = arith.constant 0 : i32
    %c0_i32_1 = arith.constant 0 : i32
    return %c0_i32, %c0_i32_0 : i32, i32
  }
  func.func @transform_11(%arg0: i32) -> (i32, i32) {
    %c0_i32 = arith.constant 0 : i32
    %c0_i32_0 = arith.constant 0 : i32
    return %arg0, %c0_i32 : i32, i32
  }
}

</mosaic_0001>

<bundles_post_ra>
// kernel: tpu_custom_call.1
= control target key start
LH: loop header
LB: loop body
LE: loop exit
PB: predicated region body
PF: predicated region fallthrough
CT: control target
= control target key end

     0   :  { %16 = vsyncpa [#allocation3], 0  ;;  %s1049_s0 = inlined_call_operand.vmem [shape: f32[8,60], index: 0, kind: input, shape index: {}]   ;;  %s1050_s1 = inlined_call_operand.vmem [shape: u32[8,128], index: 1, kind: input, shape index: {}]   ;;  %s1051_s2 = inlined_call_operand.hbm [shape: u32[8,128], index: 2, kind: input, shape index: {}]   ;;  %s1052_s3 = inlined_call_operand.hbm [shape: bf16[60,128], index: 3, kind: input, shape index: {}]   ;;  %s1053_s4 = inlined_call_operand.vmem [shape: f32[1,128], index: 4, kind: input, shape index: {}]   ;;  %s1054_s5 = inlined_call_operand.vmem [shape: bf16[128,128], index: 5, kind: input, shape index: {}]   ;;  %s1055_s6 = inlined_call_operand.vmem [shape: f32[1,128], index: 6, kind: input, shape index: {}]   ;;  %s1056_s7 = inlined_call_operand.hbm [shape: bf16[128,128], index: 7, kind: input, shape index: {}]   ;;  %s1057_s8 = inlined_call_operand.vmem [shape: f32[1,128], index: 8, kind: input, shape index: {}]   ;;  %s1058_s9 = inlined_call_operand.vmem [shape: bf16[128,5], index: 9, kind: input, shape index: {}]   ;;  %s1059_s10 = inlined_call_operand.vmem [shape: f32[1,5], index: 10, kind: input, shape index: {}]   ;;  %s1060_s11 = inlined_call_operand.hbm [shape: f32[8,5], index: 11, kind: output, shape index: {}]  }
   0x1   :  { %17 = vsyncpa [#allocation6], 0 }
   0x2   :  { %18 = vsyncpa [#allocation4], 0  ;;  %s822_s17 = smov [#allocation5]   ;;  %s728_s21 = scalar_lea.hbm %s1052_s3, 512 }
   0x3   :  { %s38_s18 = sshll.u32 %s822_s17, 4  ;;  %p729_p0 = scmp.ne.s32.totalorder %s1052_s3, %s728_s21  ;;  %s39_s18 = int_to_ptr.vmem [resolvable:$true] %s38_s18 }
   0x4   :  { %p732_p1 = scmp.lt.u32.totalorder %s728_s21, %s1052_s3 }
   0x6   :  { %p734_p2 = pnand %p732_p1, %p729_p0 }
   0x8   :  { %737 = shalt.err (!%p734_p2)
}
   0x9   :  { %s738_s26 = scalar_lea.vmem %s39_s18, 512  ;;  %p743_p4 = scmp.lt.s32.totalorder %s39_s18, %s39_s18 }
   0xa   :  { %p739_p3 = scmp.ne.s32.totalorder %s39_s18, %s738_s26  ;;  %p744_p5 = scmp.lt.s32.totalorder %s738_s26, %s738_s26 }
   0xc   :  { %p745_p6 = por %p744_p5, %p743_p4 }
   0xe   :  { %p746_p7 = pnand %p745_p6, %p739_p3 }
  0x10   :  { %749 = shalt.err (!%p746_p7)
}
  0x11   :  { %s823_s27 = smov 64   ;;  %s824_s28 = smov 4  }
  0x12   :  { %44 = dma.hbm_to_vmem [thread:$0]  %s1052_s3, 512, %s39_s18, [#allocation6], %s823_s27, %s823_s27, %s824_s28  }
  0x13   :  { %s825_s12 = smov [#allocation2]   ;;  %s826_s14 = smov [#allocation7]  }
  0x14   :  { %s29_s13 = sshll.u32 %s825_s12, 4  ;;  %s56_s15 = sshll.u32 %s826_s14, 4  ;;  %s30_s13 = int_to_ptr.vmem [resolvable:$true] %s29_s13  ;;  %s57_s15 = int_to_ptr.vmem [resolvable:$true] %s56_s15 }
  0x15   :  { %s750_s19 = scalar_lea.hbm %s1051_s2, 128 }
  0x16   :  { %p751_p8 = scmp.ne.s32.totalorder %s1051_s2, %s750_s19  ;;  %p754_p9 = scmp.lt.u32.totalorder %s750_s19, %s1051_s2 }
  0x18   :  { %p756_p10 = pnand %p754_p9, %p751_p8 }
  0x1a   :  { %759 = shalt.err (!%p756_p10)
}
  0x1b   :  { %s760_s3 = scalar_lea.vmem %s30_s13, 128  ;;  %p765_p12 = scmp.lt.s32.totalorder %s30_s13, %s30_s13 }
  0x1c   :  { %p761_p11 = scmp.ne.s32.totalorder %s30_s13, %s760_s3  ;;  %p766_p13 = scmp.lt.s32.totalorder %s760_s3, %s760_s3 }
  0x1e   :  { %p767_p0 = por %p766_p13, %p765_p12 }
  0x20   :  { %p768_p1 = pnand %p767_p0, %p761_p11 }
  0x22   :  { %771 = shalt.err (!%p768_p1)
}
  0x23   :  { %32 = dma.hbm_to_vmem [thread:$0]  %s1051_s2, 128, %s30_s13, [#allocation3]  }
  0x24   :  { %s772_s29 = scalar_lea.hbm %s1056_s7, 1024 }
  0x25   :  { %p773_p2 = scmp.ne.s32.totalorder %s1056_s7, %s772_s29  ;;  %p776_p3 = scmp.lt.u32.totalorder %s772_s29, %s1056_s7 }
  0x27   :  { %p778_p4 = pnand %p776_p3, %p773_p2 }
  0x29   :  { %781 = shalt.err (!%p778_p4)
}
  0x2a   :  { %s782_s17 = scalar_lea.vmem %s57_s15, 1024  ;;  %p787_p6 = scmp.lt.s32.totalorder %s57_s15, %s57_s15 }
  0x2b   :  { %p783_p5 = scmp.ne.s32.totalorder %s57_s15, %s782_s17  ;;  %p788_p7 = scmp.lt.s32.totalorder %s782_s17, %s782_s17 }
  0x2d   :  { %p789_p8 = por %p788_p7, %p787_p6 }
  0x2f   :  { %p790_p9 = pnand %p789_p8, %p783_p5 }
  0x31   :  { %793 = shalt.err (!%p790_p9)
}
  0x32   :  { %62 = dma.hbm_to_vmem [thread:$0]  %s1056_s7, 1024, %s57_s15, [#allocation6], %s823_s27, %s823_s27, %s824_s28  }
  0x33   :  { %816 = dma.done.wait [#allocation3], 128  }
  0x34   :  { %817 = vsyncadd [#allocation3], 4294967168 }
  0x35   :  { %818 = dma.done.wait [#allocation6], 1536  }
  0x36   :  { %819 = vsyncadd [#allocation6], 4294965760  ;;  %v827_v0 = vmov 0.0   ;;  %vm828_vm0 = vmmov 0   ;;  %v696_v1 = vld [vmem:[#allocation5] sm:$0xff]   ;;  %v697_v2 = vld [vmem:[#allocation5 + $0x8] sm:$0xff]  }
  0x37   :  { %616 = vmatprep.subr.bf16.mxu0 %v827_v0  ;;  %624 = vmatprep.mubr.msk.bf16.mxu0 %vm828_vm0, %v827_v0  ;;  %v698_v3 = vld [vmem:[#allocation5 + $0x10] sm:$0xff]   ;;  %v700_v4 = vld [vmem:[%s1054_s5] sm:$0xff]   ;;  %vm123_vm1 = vcmask 1045504   ;;  %v701_v6 = vld [vmem:[%s1054_s5 + $0x8] sm:$0xff]   ;;  %vm119_vm2 = vcmask 490496   ;;  %vm516_vm11 = vcmask 39936  }
  0x38   :  { %628 = vmatprep.subr.bf16.mxu1 %v827_v0  ;;  %644 = vmatprep.mubr.msk.bf16.mxu1 %vm828_vm0, %v827_v0  ;;  %v699_v5 = vld [vmem:[#allocation5 + $0x18] sm:$0x3f]   ;;  %v702_v9 = vld [vmem:[%s1054_s5 + $0x10] sm:$0xff]   ;;  %v703_v11 = vld [vmem:[%s1054_s5 + $0x18] sm:$0xff]  }
  0x39   :  { %617 = vmatpush3.bf16.msra.mxu0 %v696_v1  ;;  %629 = vmatpush3.bf16.msra.mxu1 %v700_v4  ;;  %v125_v7 = vsel %vm123_vm1, %v699_v5, 0  ;;  %v79_v8 = vld [vmem:[%s1049_s0] sm:$0xff]  ;;  %v705_v13 = vld [vmem:[%s1054_s5 + $0x28] sm:$0xff]   ;;  %v706_v14 = vld [vmem:[%s1054_s5 + $0x30] sm:$0xff]  }
  0x3a   :  { %618 = vmatprep.subr.bf16.mxu0 %v827_v0  ;;  %630 = vmatprep.subr.bf16.mxu1 %v827_v0  ;;  %v80_v10 = vpack.c.bf16 %v79_v8, %v79_v8  ;;  %v704_v12 = vld [vmem:[%s1054_s5 + $0x20] sm:$0xff]   ;;  %v707_v15 = vld [vmem:[%s1054_s5 + $0x38] sm:$0xff]   ;;  %v708_v16 = vld [vmem:[#allocation7] sm:$0xff]  }
  0x3b   :  { %v709_v17 = vld [vmem:[#allocation7 + $0x8] sm:$0xff]   ;;  %v710_v18 = vld [vmem:[#allocation7 + $0x10] sm:$0xff]   ;;  %v711_v19 = vld [vmem:[#allocation7 + $0x18] sm:$0xff]  }
  0x3c   :  { %v712_v20 = vld [vmem:[#allocation7 + $0x20] sm:$0xff]   ;;  %v713_v21 = vld [vmem:[#allocation7 + $0x28] sm:$0xff]   ;;  %v545_v22 = vld [vmem:[%s1053_s4] ss:$0 sm:$0xff] }
  0x3d   :  { %619 = vmatpush3.bf16.msra.mxu0 %v697_v2  ;;  %631 = vmatpush3.bf16.msra.mxu1 %v701_v6  ;;  %v167_v23 = vld [vmem:[%s1050_s1] sm:$0xff]  ;;  %v714_v31 = vld [vmem:[#allocation7 + $0x30] sm:$0xff]   ;;  %v717_v34 = vld [vmem:[%s1058_s9 + $0x8] sm:$0xff]  }
  0x3e   :  { %620 = vmatprep.subr.bf16.mxu0 %v827_v0  ;;  %632 = vmatprep.subr.bf16.mxu1 %v827_v0  ;;  %vm168_vm3 = vcmp.ge.u32.totalorder %v167_v23, 1288490189  ;;  %v715_v32 = vld [vmem:[#allocation7 + $0x38] sm:$0xff]   ;;  %v718_v35 = vld [vmem:[%s1058_s9 + $0x10] sm:$0xff]   ;;  %v719_v36 = vld [vmem:[%s1058_s9 + $0x18] sm:$0xff]  }
  0x3f   :  { %v716_v33 = vld [vmem:[%s1058_s9] sm:$0xff]   ;;  %v721_v38 = vld [vmem:[%s1058_s9 + $0x28] sm:$0xff]   ;;  %v722_v48 = vld [vmem:[%s1058_s9 + $0x30] sm:$0xff]  }
  0x40   :  { %v720_v37 = vld [vmem:[%s1058_s9 + $0x20] sm:$0xff]   ;;  %v723_v49 = vld [vmem:[%s1058_s9 + $0x38] sm:$0xff]  }
  0x41   :  { %621 = vmatpush3.bf16.msra.mxu0 %v698_v3  ;;  %633 = vmatpush3.bf16.msra.mxu1 %v702_v9  ;;  %v551_v39 = vld [vmem:[%s1055_s6] ss:$0 sm:$0xff] }
  0x42   :  { %622 = vmatprep.subr.bf16.mxu0 %v827_v0  ;;  %634 = vmatprep.subr.bf16.mxu1 %v827_v0  ;;  %v285_v40 = vld [vmem:[#allocation2] sm:$0xff] }
  0x43   :  { %vm286_vm7 = vcmp.ge.u32.totalorder %v285_v40, 1288490189  ;;  %v563_v50 = vld [vmem:[%s1057_s8] ss:$0 sm:$0xff]  ;;  %s829_s8 = smov [#allocation8]  }
  0x44   :  { %v575_v58 = vld [vmem:[%s1059_s10] ss:$0 sm:$0xff]  ;;  %s535_s9 = sshll.u32 %s829_s8, 4  ;;  %s536_s9 = int_to_ptr.vmem [resolvable:$true] %s535_s9 }
  0x45   :  { %623 = vmatpush3.bf16.msra.mxu0 %v125_v7  ;;  %635 = vmatpush3.bf16.msra.mxu1 %v703_v11  ;;  %s794_s10 = scalar_lea.vmem %s536_s9, 128  ;;  %p799_p11 = scmp.lt.s32.totalorder %s536_s9, %s536_s9 }
  0x46   :  { %648 = vmatprep.subr.bf16.mxu0 %v827_v0  ;;  %636 = vmatprep.subr.bf16.mxu1 %v827_v0  ;;  %p795_p10 = scmp.ne.s32.totalorder %s536_s9, %s794_s10  ;;  %p800_p12 = scmp.lt.s32.totalorder %s794_s10, %s794_s10 }
  0x48   :  { %625 = vmatmul.mubr.msk.bf16.vlgmr.msra.gmra.mrb[0].mxu0 %vm119_vm2, %v80_v10  ;;  %p801_p13 = por %p800_p12, %p799_p11 }
  0x49   :  { %664 = vmatprep.mubr.msk.bf16.mxu0 %vm828_vm0, %v827_v0  ;;  %637 = vmatpush3.bf16.msra.mxu1 %v704_v12 }
  0x4a   :  { %638 = vmatprep.subr.bf16.mxu1 %v827_v0  ;;  %649 = vmatpush3.bf16.msra.mxu0 %v708_v16  ;;  %p802_p0 = pnand %p801_p13, %p795_p10 }
  0x4b   :  { %650 = vmatprep.subr.bf16.mxu0 %v827_v0 }
  0x4d   :  { %639 = vmatpush3.bf16.msra.mxu1 %v705_v13 }
  0x4e   :  { %640 = vmatprep.subr.bf16.mxu1 %v827_v0  ;;  %651 = vmatpush3.bf16.msra.mxu0 %v709_v17 }
  0x4f   :  { %652 = vmatprep.subr.bf16.mxu0 %v827_v0 }
  0x51   :  { %641 = vmatpush3.bf16.msra.mxu1 %v706_v14 }
  0x52   :  { %642 = vmatprep.subr.bf16.mxu1 %v827_v0  ;;  %653 = vmatpush3.bf16.msra.mxu0 %v710_v18 }
  0x53   :  { %654 = vmatprep.subr.bf16.mxu0 %v827_v0 }
  0x55   :  { %643 = vmatpush3.bf16.msra.mxu1 %v707_v15 }
  0x56   :  { %668 = vmatprep.subr.bf16.mxu1 %v827_v0  ;;  %655 = vmatpush3.bf16.msra.mxu0 %v711_v19 }
  0x57   :  { %656 = vmatprep.subr.bf16.mxu0 %v827_v0 }
  0x5a   :  { %657 = vmatpush3.bf16.msra.mxu0 %v712_v20 }
  0x5b   :  { %658 = vmatprep.subr.bf16.mxu0 %v827_v0 }
  0x5e   :  { %659 = vmatpush3.bf16.msra.mxu0 %v713_v21 }
  0x5f   :  { %660 = vmatprep.subr.bf16.mxu0 %v827_v0 }
  0x62   :  { %661 = vmatpush3.bf16.msra.mxu0 %v714_v31 }
  0x63   :  { %662 = vmatprep.subr.bf16.mxu0 %v827_v0 }
  0x66   :  { %663 = vmatpush3.bf16.msra.mxu0 %v715_v32 }
 0x11b   :  { %v161_v24 = vpop.f32.mrb[0].mxu0 }
 0x11c   :  { %v162_v25 = vadd.f32 %v545_v22, %v161_v24  ;;  %v626_v26 = vpop.f32.mrb[1].mxu0 }
 0x11d   :  { %v164_v27 = vpop.f32.mrb[2].mxu0 }
 0x11e   :  { %vm169_vm4 = vcmp.gt.f32.partialorder %v162_v25, 0.0  ;;  %v171_v28 = vmul.f32 1.4285715, %v162_v25  ;;  %v627_v29 = vpop.f32.mrb[3].mxu0 }
 0x11f   :  { %vm170_vm5 = vmand %vm168_vm3, %vm169_vm4 }
 0x120   :  { %v561_v30 = vpack.c.bf16 %v171_v28, %v171_v28  ;;  %vm560_vm6 = vmpackc.low %vm170_vm5, %vm170_vm5 }
 0x122   :  { %645 = vmatmul.mubr.msk.bf16.vlgmr.msra.gmra.mrb[0].mxu1 %vm560_vm6, %v561_v30 }
 0x123   :  { %684 = vmatprep.mubr.msk.bf16.mxu1 %vm828_vm0, %v827_v0  ;;  %669 = vmatpush3.bf16.msra.mxu1 %v716_v33 }
 0x124   :  { %670 = vmatprep.subr.bf16.mxu1 %v827_v0 }
 0x127   :  { %671 = vmatpush3.bf16.msra.mxu1 %v717_v34 }
 0x128   :  { %672 = vmatprep.subr.bf16.mxu1 %v827_v0 }
 0x12b   :  { %673 = vmatpush3.bf16.msra.mxu1 %v718_v35 }
 0x12c   :  { %674 = vmatprep.subr.bf16.mxu1 %v827_v0 }
 0x12f   :  { %675 = vmatpush3.bf16.msra.mxu1 %v719_v36 }
 0x130   :  { %676 = vmatprep.subr.bf16.mxu1 %v827_v0 }
 0x133   :  { %677 = vmatpush3.bf16.msra.mxu1 %v720_v37 }
 0x134   :  { %678 = vmatprep.subr.bf16.mxu1 %v827_v0 }
 0x137   :  { %679 = vmatpush3.bf16.msra.mxu1 %v721_v38 }
 0x138   :  { %680 = vmatprep.subr.bf16.mxu1 %v827_v0 }
 0x13b   :  { %681 = vmatpush3.bf16.msra.mxu1 %v722_v48 }
 0x13c   :  { %682 = vmatprep.subr.bf16.mxu1 %v827_v0 }
 0x13f   :  { %683 = vmatpush3.bf16.msra.mxu1 %v723_v49 }
 0x1f5   :  { %v279_v41 = vpop.f32.mrb[0].mxu1 }
 0x1f6   :  { %v280_v42 = vadd.f32 %v551_v39, %v279_v41  ;;  %v646_v43 = vpop.f32.mrb[1].mxu1 }
 0x1f7   :  { %v282_v44 = vpop.f32.mrb[2].mxu1 }
 0x1f8   :  { %vm287_vm8 = vcmp.gt.f32.partialorder %v280_v42, 0.0  ;;  %v289_v45 = vmul.f32 1.4285715, %v280_v42  ;;  %v647_v46 = vpop.f32.mrb[3].mxu1 }
 0x1f9   :  { %vm288_vm9 = vmand %vm286_vm7, %vm287_vm8 }
 0x1fa   :  { %vm572_vm10 = vmpackc.low %vm288_vm9, %vm288_vm9  ;;  %v573_v47 = vpack.c.bf16 %v289_v45, %v289_v45 }
 0x1fc   :  { %665 = vmatmul.mubr.msk.bf16.vlgmr.msra.gmra.mrb[4].mxu0 %vm572_vm10, %v573_v47 }
 0x2cf   :  { %v397_v51 = vpop.f32.mrb[4].mxu0 }
 0x2d0   :  { %v398_v52 = vadd.f32 %v563_v50, %v397_v51  ;;  %v666_v53 = vpop.f32.mrb[5].mxu0 }
 0x2d1   :  { %v400_v54 = vpop.f32.mrb[6].mxu0 }
 0x2d2   :  { %v403_v55 = vmax.f32 %v398_v52, 0.0  ;;  %v667_v56 = vpop.f32.mrb[7].mxu0 }
 0x2d4   :  { %v404_v57 = vpack.c.bf16 %v403_v55, %v403_v55 }
 0x2d6   :  { %685 = vmatmul.mubr.bf16.vlgmr.msra.gmra.mrb[4].mxu1 %v404_v57 }
 0x3a9   :  { %v510_v59 = vpop.f32.mrb[4].mxu1 }
 0x3aa   :  { %v511_v60 = vadd.f32 %v575_v58, %v510_v59  ;;  %v686_v61 = vpop.f32.mrb[5].mxu1 }
 0x3ab   :  { %v513_v62 = vpop.f32.mrb[6].mxu1 }
 0x3ac   :  { %v687_v63 = vpop.f32.mrb[7].mxu1  ;;  %v517_v0 = vsel %vm516_vm11, %v511_v60, -inf }
 0x3ad   :  { %518 = vmax.xlane.f32.xlu0 %v517_v0 }
 0x43a   :  { %v519_v1 = vpop.xlane.xlu0 %518 }
 0x43b   :  { %v520_v2 = vsub.f32 %v511_v60, %v519_v1 }
 0x43d   :  { %v521_v3 = vmul.f32 1.442695, %v520_v2 }
 0x43f   :  { %724 = vpow2.f32 %v521_v3 }
 0x449   :  { %v725_v4 = vpop.eup %724 }
 0x44a   :  { %v523_v5 = vsel %vm516_vm11, %v725_v4, 0.0 }
 0x44b   :  { %524 = vadd.xlane.f32.xlu0 %v523_v5 }
 0x4d8   :  { %v525_v6 = vpop.xlane.xlu0 %524 }
 0x4d9   :  { %726 = vrcp.f32 %v525_v6 }
 0x4e3   :  { %v727_v7 = vpop.eup %726 }
 0x4e4   :  { %v527_v8 = vmul.f32 %v727_v7, %v725_v4 }
 0x4e6   :  { %528 = vst.msk [vmem:[#allocation8] sm:$0xff] %vm516_vm11, %v527_v8 }
 0x4e7   :  { %805 = shalt.err (!%p802_p0)
}
 0x4e8   :  { %s806_s14 = scalar_lea.hbm %s1060_s11, 128 }
 0x4e9   :  { %p807_p1 = scmp.ne.s32.totalorder %s1060_s11, %s806_s14  ;;  %p810_p2 = scmp.lt.u32.totalorder %s806_s14, %s1060_s11 }
 0x4eb   :  { %p812_p3 = pnand %p810_p2, %p807_p1 }
 0x4ed   :  { %815 = shalt.err (!%p812_p3)
}
 0x4ee   :  { %538 = dma.vmem_to_hbm [thread:$0]  %s536_s9, 128, %s1060_s11, [#allocation4]  }
 0x4ef   :  { %820 = dma.done.wait [#allocation4], 128  }
 0x4f0   :  { %821 = vsyncadd [#allocation4], 4294967168 }
 0x4f1   :  { %542 = vsyncpa [#allocation3], 1 }
 0x4f2   :  { %543 = vsyncpa [#allocation6], 1 }
 0x4f3   :  { %544 = vsyncpa [#allocation4], 1 }

</bundles_post_ra>
